<compile_context>
chip_gen: v7x
topology: tpu7x:2x2x1
jax: 0.10.0
libtpu: 0.0.40
codegen_flags: <defaults>
</compile_context>

<pallas_src>
import math
import functools

import jax
import jax.numpy as jnp
from jax import lax
from jax.experimental import pallas as pl
from jax.experimental.pallas import tpu as pltpu


_VMEM_LIMIT = 48 * 1024 * 1024  # headroom on v7x (64 MiB physical), > defaults elsewhere


# ----------------------------------------------------------------------------
# Kernel 1: Linear layer  y = x @ Wt + b   with Wt = W^T pre-transposed outside.
#   grid = (row tiles ["parallel"], K tiles ["arbitrary"]); f32 accumulator.
# ----------------------------------------------------------------------------
def _linear_kernel(x_ref, w_ref, b_ref, o_ref, acc_ref):
    @pl.when(pl.program_id(1) == 0)
    def _():
        acc_ref[...] = jnp.zeros_like(acc_ref)

    acc_ref[...] += jnp.dot(x_ref[...], w_ref[...],
                            preferred_element_type=jnp.float32)

    @pl.when(pl.program_id(1) == pl.num_programs(1) - 1)
    def _():
        o_ref[...] = (acc_ref[...] + b_ref[...]).astype(o_ref.dtype)


def linear_pallas(x2d, w_t, b, *, tile_n=512, tile_k=512):
    """x2d: (N, d_in) bf16. w_t: (d_in, d_out) bf16 (already transposed).
    b: (d_out,) f32. Returns (N, d_out) in x2d.dtype."""
    N, d_in = x2d.shape
    d_out = w_t.shape[1]

    tn = min(tile_n, N)
    tk = min(tile_k, d_in)
    if d_in % tk != 0:
        # Avoid padded (garbage) K blocks feeding the accumulator.
        tk = d_in

    grid = (pl.cdiv(N, tn), d_in // tk)
    return pl.pallas_call(
        _linear_kernel,
        out_shape=jax.ShapeDtypeStruct((N, d_out), x2d.dtype),
        grid=grid,
        in_specs=[
            pl.BlockSpec((tn, tk), lambda i, k: (i, k)),
            pl.BlockSpec((tk, d_out), lambda i, k: (k, 0)),
            pl.BlockSpec((1, d_out), lambda i, k: (0, 0)),
        ],
        out_specs=pl.BlockSpec((tn, d_out), lambda i, k: (i, 0)),
        scratch_shapes=[pltpu.VMEM((tn, d_out), jnp.float32)],
        compiler_params=pltpu.CompilerParams(
            dimension_semantics=("parallel", "arbitrary"),
            vmem_limit_bytes=_VMEM_LIMIT),
    )(x2d, w_t, b.astype(jnp.float32).reshape(1, d_out))


# ----------------------------------------------------------------------------
# Kernel 2: flash-style multi-head scaled dot-product attention.
#   grid = (B, query tiles, KV tiles); KV axis last + "arbitrary".
#   All heads handled per step; heads are lane-slices of d_model so no
#   (B,S,H,d_k) <-> (B,H,S,d_k) HBM transposes exist and the output store is a
#   single lane-dense (1, TQ, d_model) block.
# ----------------------------------------------------------------------------
def _flash_mha_kernel(q_ref, k_ref, v_ref, *rest,
                      head_size, d_k, has_mask, seq_len, kv_block,
                      need_kv_guard):
    if has_mask:
        mask_ref, o_ref, m_sc, l_sc, acc_sc = rest
    else:
        o_ref, m_sc, l_sc, acc_sc = rest

    kv = pl.program_id(2)

    @pl.when(kv == 0)
    def _():
        m_sc[...] = jnp.full_like(m_sc, -jnp.inf)
        l_sc[...] = jnp.zeros_like(l_sc)
        acc_sc[...] = jnp.zeros_like(acc_sc)

    tq = q_ref.shape[1]
    tkv = k_ref.shape[1]

    # Fold 1/sqrt(d_k) into q once per tile (instead of per-head score scaling).
    scale = jnp.asarray(1.0 / math.sqrt(d_k), q_ref.dtype)
    q = q_ref[0] * scale                   # (TQ, d_model) bf16
    k = k_ref[0]                           # (TKV, d_model) bf16
    v = v_ref[0]                           # (TKV, d_model) bf16

    # Hoisted additive bias: one select per grid step instead of H selects.
    bias = None
    if has_mask:
        bias = jnp.where(mask_ref[0] != 0, 0.0, -1e9).astype(jnp.float32)

    # Guard padded KV columns (only generated when S % TKV != 0).
    pad_bias = None
    if need_kv_guard:
        col = kv * kv_block + lax.broadcasted_iota(jnp.int32, (tq, tkv), 1)
        pad_bias = jnp.where(col < seq_len, 0.0, -1e30).astype(jnp.float32)

    for h in range(head_size):             # static unroll over heads
        sl = slice(h * d_k, (h + 1) * d_k)
        qh = q[:, sl]                      # (TQ, d_k)
        kh = k[:, sl]                      # (TKV, d_k)
        vh = v[:, sl]                      # (TKV, d_k)

        # Q @ K^T without materializing a transpose of K.
        s = lax.dot_general(qh, kh,
                            dimension_numbers=(((1,), (1,)), ((), ())),
                            preferred_element_type=jnp.float32)
        if bias is not None:
            s = s + bias
        if pad_bias is not None:
            s = s + pad_bias

        m_prev = m_sc[h]                   # (TQ, 1) f32
        l_prev = l_sc[h]
        m_new = jnp.maximum(m_prev, jnp.max(s, axis=-1, keepdims=True))
        alpha = jnp.exp(m_prev - m_new)
        p = jnp.exp(s - m_new)             # (TQ, TKV) f32

        l_sc[h] = alpha * l_prev + jnp.sum(p, axis=-1, keepdims=True)
        m_sc[h] = m_new
        acc_sc[:, sl] = alpha * acc_sc[:, sl] + jnp.dot(
            p.astype(vh.dtype), vh, preferred_element_type=jnp.float32)

    @pl.when(kv == pl.num_programs(2) - 1)
    def _():
        # Per-head normalization in scratch, then one lane-dense store.
        for h in range(head_size):
            sl = slice(h * d_k, (h + 1) * d_k)
            inv = pl.reciprocal(l_sc[h], approx=True)
            acc_sc[:, sl] = acc_sc[:, sl] * inv
        o_ref[0] = acc_sc[...].astype(o_ref.dtype)


def attention_pallas(q, k, v, mask, head_size, *, q_tile=128, kv_tile=256):
    """q, k, v: (B, S, d_model) bf16. mask: (B, S, S) int8 or None.
    Returns out (B, S, d_model) in q.dtype."""
    B, S, d_model = q.shape
    d_k = d_model // head_size
    tq = min(q_tile, S)
    tkv = min(kv_tile, S)
    grid = (B, pl.cdiv(S, tq), pl.cdiv(S, tkv))

    has_mask = mask is not None
    need_kv_guard = (S % tkv) != 0

    kernel = functools.partial(
        _flash_mha_kernel, head_size=head_size, d_k=d_k, has_mask=has_mask,
        seq_len=S, kv_block=tkv, need_kv_guard=need_kv_guard)

    in_specs = [
        pl.BlockSpec((1, tq, d_model), lambda b, qi, ki: (b, qi, 0)),
        pl.BlockSpec((1, tkv, d_model), lambda b, qi, ki: (b, ki, 0)),
        pl.BlockSpec((1, tkv, d_model), lambda b, qi, ki: (b, ki, 0)),
    ]
    operands = [q, k, v]
    if has_mask:
        in_specs.append(pl.BlockSpec((1, tq, tkv), lambda b, qi, ki: (b, qi, ki)))
        operands.append(mask)

    return pl.pallas_call(
        kernel,
        out_shape=jax.ShapeDtypeStruct((B, S, d_model), q.dtype),
        grid=grid,
        in_specs=in_specs,
        out_specs=pl.BlockSpec((1, tq, d_model), lambda b, qi, ki: (b, qi, 0)),
        scratch_shapes=[
            pltpu.VMEM((head_size, tq, 1), jnp.float32),   # m
            pltpu.VMEM((head_size, tq, 1), jnp.float32),   # l
            pltpu.VMEM((tq, d_model), jnp.float32),        # acc (all heads)
        ],
        compiler_params=pltpu.CompilerParams(
            dimension_semantics=("parallel", "parallel", "arbitrary"),
            vmem_limit_bytes=_VMEM_LIMIT),
    )(*operands)


# ----------------------------------------------------------------------------
# Module wrapper (mirrors MultiHeadedAttention.forward)
# ----------------------------------------------------------------------------
class MultiHeadedAttentionPallas:
    def __init__(self, head_size, d_model, key, dropout=0.1):
        if d_model % head_size != 0:
            raise ValueError("Incompatible hyper-parameters: d_model and head_size")
        self.d_k = d_model // head_size
        self.head_size = head_size
        self.d_model = d_model

        # Deterministic init matching nn.Linear default: U(-1/sqrt(in), 1/sqrt(in))
        bound = 1.0 / math.sqrt(d_model)
        keys = jax.random.split(key, 8)
        self.weights, self.biases = [], []
        for i in range(4):
            w = jax.random.uniform(keys[2 * i], (d_model, d_model),
                                   minval=-bound, maxval=bound, dtype=jnp.float32)
            b = jax.random.uniform(keys[2 * i + 1], (d_model,),
                                   minval=-bound, maxval=bound, dtype=jnp.float32)
            self.weights.append(w)
            self.biases.append(b)

        # Kernel-side parameters: pre-transposed bf16 weights, f32 biases.
        self.w_t = [w.T.astype(jnp.bfloat16) for w in self.weights]
        self.b32 = [b.astype(jnp.float32) for b in self.biases]
        # Fused QKV projection (self-attention path): (d_model, 3*d_model).
        self.wqkv_t = jnp.concatenate(self.w_t[:3], axis=1)
        self.bqkv = jnp.concatenate(self.b32[:3], axis=0)

        self.attn = None   # TODO(synk): p_attn not materialized (flash kernel).

    def __call__(self, query, key, value, mask=None):
        B, S, _ = query.shape
        dm = self.d_model

        if (query is key) and (key is value):
            # Self-attention: fused QKV projection reads the activation once.
            x2d = query.reshape(B * S, dm).astype(jnp.bfloat16)
            qkv = linear_pallas(x2d, self.wqkv_t, self.bqkv)      # (B*S, 3*dm)
            q = qkv[:, 0 * dm:1 * dm].reshape(B, S, dm)
            k = qkv[:, 1 * dm:2 * dm].reshape(B, S, dm)
            v = qkv[:, 2 * dm:3 * dm].reshape(B, S, dm)
        else:
            def project(x, w_t, b):
                y = linear_pallas(x.reshape(B * S, dm).astype(jnp.bfloat16), w_t, b)
                return y.reshape(B, S, dm)
            q = project(query, self.w_t[0], self.b32[0])
            k = project(key, self.w_t[1], self.b32[1])
            v = project(value, self.w_t[2], self.b32[2])

        if mask is None:
            mask_b = None          # no-mask path streams no mask tensor at all
        else:
            m = jnp.asarray(mask)
            if m.ndim == 2:
                m = m[None]
            # Torch's unsqueeze(1) head broadcast happens in-kernel; broadcast
            # any (B,1,S)/(1,S,S) padding/causal mask to (B,S,S) here.
            mask_b = jnp.broadcast_to(m, (B, S, S)).astype(jnp.int8)

        x = attention_pallas(q, k, v, mask_b, self.head_size)

        out2d = linear_pallas(x.reshape(B * S, dm), self.w_t[3], self.b32[3])
        return out2d.reshape(B, S, dm).astype(query.dtype)


# ----------------------------------------------------------------------------
# Pure-JAX f32 reference (for correctness check)
# ----------------------------------------------------------------------------
def _reference(mha, query, key, value, mask):
    B, S, d_model = query.shape
    H, d_k = mha.head_size, mha.d_k

    def lin(x, w, b):
        return x @ w.T + b

    q = lin(query, mha.weights[0], mha.biases[0]).reshape(B, S, H, d_k).transpose(0, 2, 1, 3)
    k = lin(key, mha.weights[1], mha.biases[1]).reshape(B, S, H, d_k).transpose(0, 2, 1, 3)
    v = lin(value, mha.weights[2], mha.biases[2]).reshape(B, S, H, d_k).transpose(0, 2, 1, 3)

    scores = jnp.einsum("bhqd,bhkd->bhqk", q, k) / math.sqrt(d_k)
    if mask is not None:
        m = jnp.asarray(mask).reshape(B, 1, S, S)
        scores = jnp.where(m == 0, -1e9, scores)
    p = jax.nn.softmax(scores, axis=-1)
    x = jnp.einsum("bhqk,bhkd->bhqd", p, v)
    x = x.transpose(0, 2, 1, 3).reshape(B, S, H * d_k)
    return lin(x, mha.weights[3], mha.biases[3])


if __name__ == "__main__":
    B, S, d_model, head_size = 2, 8, 32, 4

    root = jax.random.PRNGKey(0)
    k_param, k_x, k_q, k_k, k_v = jax.random.split(root, 5)

    mha = MultiHeadedAttentionPallas(head_size, d_model, k_param)

    # --- Check 1: self-attention (fused QKV path) with a causal mask ---------
    x = jax.random.normal(k_x, (B, S, d_model), dtype=jnp.float32)
    mask = jnp.tril(jnp.ones((S, S), dtype=jnp.int32))[None].repeat(B, axis=0)

    out = jax.block_until_ready(mha(x, x, x, mask=mask))
    ref = _reference(mha, x, x, x, mask)
    assert out.shape == (B, S, d_model)
    # Relaxed tolerance: bf16 operands + EUP approximate reciprocal.
    assert jnp.allclose(out, ref, atol=5e-2, rtol=5e-2), "self-attn mismatch vs reference"

    # --- Check 2: cross-attention (separate projections), no mask ------------
    q_in = jax.random.normal(k_q, (B, S, d_model), dtype=jnp.float32)
    k_in = jax.random.normal(k_k, (B, S, d_model), dtype=jnp.float32)
    v_in = jax.random.normal(k_v, (B, S, d_model), dtype=jnp.float32)

    out2 = jax.block_until_ready(mha(q_in, k_in, v_in, mask=None))
    ref2 = _reference(mha, q_in, k_in, v_in, None)
    assert jnp.allclose(out2, ref2, atol=5e-2, rtol=5e-2), "cross-attn mismatch vs reference"

    print("KERNEL_OK")
</pallas_src>

<mosaic_0001>
module attributes {stable_mosaic.version = 11 : i64} {
  func.func @_linear_kernel(%arg0: i32, %arg1: i32, %arg2: memref<16x32xbf16, #tpu.memory_space<vmem>>, %arg3: memref<32x96xbf16, #tpu.memory_space<vmem>>, %arg4: memref<1x96xf32, #tpu.memory_space<vmem>>, %arg5: memref<16x96xbf16, #tpu.memory_space<vmem>>, %arg6: memref<16x96xf32, #tpu.memory_space<vmem>>) attributes {dimension_semantics = [#tpu.dimension_semantics<parallel>, #tpu.dimension_semantics<arbitrary>], iteration_bounds = array<i64: 1, 1>, scalar_prefetch = 0 : i64, scratch_operands = 1 : i64, tpu.core_type = #tpu.core_type<tc>, window_params = [{transform_indices = @transform_0, window_bounds = array<i64: 16, 32>}, {transform_indices = @transform_1, window_bounds = array<i64: 32, 96>}, {pipeline_mode = #tpu.pipeline_mode<synchronous>, transform_indices = @transform_2, window_bounds = array<i64: 1, 96>}, {transform_indices = @transform_3, window_bounds = array<i64: 16, 96>}]} {
    %c0_i32 = arith.constant 0 : i32
    %0 = arith.cmpi eq, %arg1, %c0_i32 : i32
    %1 = arith.extui %0 : i1 to i32
    %c0_i32_0 = arith.constant 0 : i32
    %2 = arith.cmpi ne, %1, %c0_i32_0 : i32
    scf.if %2 {
      %cst_10 = arith.constant 0.000000e+00 : f32
      %12 = vector.broadcast %cst_10 : f32 to vector<16x96xf32>
      %c0_11 = arith.constant 0 : index
      %c0_12 = arith.constant 0 : index
      %13 = vector.load %arg6[%c0_11, %c0_12] : memref<16x96xf32, #tpu.memory_space<vmem>>, vector<16x96xf32>
      tpu.vector_store %arg6[%c0_11, %c0_12], %12 {strides = array<i32>} : memref<16x96xf32, #tpu.memory_space<vmem>>, vector<16x96xf32>,
    } else {
    }
    %c0 = arith.constant 0 : index
    %c0_1 = arith.constant 0 : index
    %3 = vector.load %arg6[%c0, %c0_1] : memref<16x96xf32, #tpu.memory_space<vmem>>, vector<16x96xf32>
    %c0_2 = arith.constant 0 : index
    %c0_3 = arith.constant 0 : index
    %4 = vector.load %arg2[%c0_2, %c0_3] : memref<16x32xbf16, #tpu.memory_space<vmem>>, vector<16x32xbf16>
    %c0_4 = arith.constant 0 : index
    %c0_5 = arith.constant 0 : index
    %5 = vector.load %arg3[%c0_4, %c0_5] : memref<32x96xbf16, #tpu.memory_space<vmem>>, vector<32x96xbf16>
    %cst = arith.constant dense<0.000000e+00> : vector<16x96xf32>
    %6 = tpu.matmul %4, %5, %cst {dimension_numbers = #tpu.dot_dimension_numbers<[1], [0], [0], [1], [0, 0, 1, 1], [], []>} : vector<16x32xbf16>, vector<32x96xbf16>, vector<16x96xf32> -> vector<16x96xf32>
    %7 = arith.addf %3, %6 : vector<16x96xf32>
    %c0_6 = arith.constant 0 : index
    %c0_7 = arith.constant 0 : index
    %8 = vector.load %arg6[%c0_6, %c0_7] : memref<16x96xf32, #tpu.memory_space<vmem>>, vector<16x96xf32>
    tpu.vector_store %arg6[%c0_6, %c0_7], %7 {strides = array<i32>} : memref<16x96xf32, #tpu.memory_space<vmem>>, vector<16x96xf32>,
    %c0_i32_8 = arith.constant 0 : i32
    %9 = arith.cmpi eq, %arg1, %c0_i32_8 : i32
    %10 = arith.extui %9 : i1 to i32
    %c0_i32_9 = arith.constant 0 : i32
    %11 = arith.cmpi ne, %10, %c0_i32_9 : i32
    scf.if %11 {
      %c0_10 = arith.constant 0 : index
      %c0_11 = arith.constant 0 : index
      %12 = vector.load %arg6[%c0_10, %c0_11] : memref<16x96xf32, #tpu.memory_space<vmem>>, vector<16x96xf32>
      %c0_12 = arith.constant 0 : index
      %c0_13 = arith.constant 0 : index
      %13 = vector.load %arg4[%c0_12, %c0_13] : memref<1x96xf32, #tpu.memory_space<vmem>>, vector<1x96xf32>
      %14 = vector.broadcast %13 : vector<1x96xf32> to vector<16x96xf32>
      %15 = arith.addf %12, %14 : vector<16x96xf32>
      %16 = arith.truncf %15 : vector<16x96xf32> to vector<16x96xbf16>
      %c0_14 = arith.constant 0 : index
      %c0_15 = arith.constant 0 : index
      %17 = vector.load %arg5[%c0_14, %c0_15] : memref<16x96xbf16, #tpu.memory_space<vmem>>, vector<16x96xbf16>
      tpu.vector_store %arg5[%c0_14, %c0_15], %16 {strides = array<i32>} : memref<16x96xbf16, #tpu.memory_space<vmem>>, vector<16x96xbf16>,
    } else {
    }
    return
  }
  func.func @transform_0(%arg0: i32, %arg1: i32) -> (i32, i32) {
    %c0_i32 = arith.constant 0 : i32
    return %arg0, %arg1 : i32, i32
  }
  func.func @transform_1(%arg0: i32, %arg1: i32) -> (i32, i32) {
    %c0_i32 = arith.constant 0 : i32
    %c0_i32_0 = arith.constant 0 : i32
    return %arg1, %c0_i32 : i32, i32
  }
  func.func @transform_2(%arg0: i32, %arg1: i32) -> (i32, i32) {
    %c0_i32 = arith.constant 0 : i32
    %c0_i32_0 = arith.constant 0 : i32
    %c0_i32_1 = arith.constant 0 : i32
    return %c0_i32, %c0_i32_0 : i32, i32
  }
  func.func @transform_3(%arg0: i32, %arg1: i32) -> (i32, i32) {
    %c0_i32 = arith.constant 0 : i32
    %c0_i32_0 = arith.constant 0 : i32
    return %arg0, %c0_i32 : i32, i32
  }
}

</mosaic_0001>

<bundles_post_ra>
// kernel: tpu_custom_call.1
= control target key start
LH: loop header
LB: loop body
LE: loop exit
PB: predicated region body
PF: predicated region fallthrough
CT: control target
= control target key end

     0   :  { %8 = vsyncpa [#allocation4], 0  ;;  %s350_s0 = inlined_call_operand.hbm [shape: bf16[16,32], index: 0, kind: input, shape index: {}]   ;;  %s351_s1 = inlined_call_operand.hbm [shape: bf16[32,96], index: 1, kind: input, shape index: {}]   ;;  %s352_s2 = inlined_call_operand.vmem [shape: f32[1,96], index: 2, kind: input, shape index: {}]   ;;  %s353_s3 = inlined_call_operand.hbm [shape: bf16[16,96], index: 3, kind: output, shape index: {}]  }
   0x1   :  { %9 = vsyncpa [#allocation7], 0 }
   0x2   :  { %10 = vsyncpa [#allocation5], 0  ;;  %s271_s12 = smov [#allocation3]   ;;  %s199_s16 = scalar_lea.hbm %s350_s0, 128 }
   0x3   :  { %s16_s13 = sshll.u32 %s271_s12, 4  ;;  %p200_p0 = scmp.ne.s32.totalorder %s350_s0, %s199_s16  ;;  %s17_s13 = int_to_ptr.vmem [resolvable:$true] %s16_s13 }
   0x4   :  { %p203_p1 = scmp.lt.u32.totalorder %s199_s16, %s350_s0 }
   0x6   :  { %p205_p2 = pnand %p203_p1, %p200_p0 }
   0x8   :  { %208 = shalt.err (!%p205_p2)
}
   0x9   :  { %s209_s21 = scalar_lea.vmem %s17_s13, 128  ;;  %p214_p4 = scmp.lt.s32.totalorder %s17_s13, %s17_s13 }
   0xa   :  { %p210_p3 = scmp.ne.s32.totalorder %s17_s13, %s209_s21  ;;  %p215_p5 = scmp.lt.s32.totalorder %s209_s21, %s209_s21 }
   0xc   :  { %p216_p6 = por %p215_p5, %p214_p4 }
   0xe   :  { %p217_p7 = pnand %p216_p6, %p210_p3 }
  0x10   :  { %220 = shalt.err (!%p217_p7)
}
  0x11   :  { %s272_s22 = smov 64   ;;  %s273_s23 = smov 4  }
  0x12   :  { %22 = dma.hbm_to_vmem [thread:$0]  %s350_s0, 128, %s17_s13, [#allocation4], %s272_s22, %s272_s22, %s273_s23  }
  0x13   :  { %s274_s26 = smov [#allocation6]   ;;  %s221_s30 = scalar_lea.hbm %s351_s1, 256 }
  0x14   :  { %s28_s27 = sshll.u32 %s274_s26, 4  ;;  %p222_p8 = scmp.ne.s32.totalorder %s351_s1, %s221_s30  ;;  %s29_s27 = int_to_ptr.vmem [resolvable:$true] %s28_s27 }
  0x15   :  { %p225_p9 = scmp.lt.u32.totalorder %s221_s30, %s351_s1 }
  0x17   :  { %p227_p10 = pnand %p225_p9, %p222_p8 }
  0x19   :  { %230 = shalt.err (!%p227_p10)
}
  0x1a   :  { %s231_s8 = scalar_lea.vmem %s29_s27, 256  ;;  %p236_p12 = scmp.lt.s32.totalorder %s29_s27, %s29_s27 }
  0x1b   :  { %p232_p11 = scmp.ne.s32.totalorder %s29_s27, %s231_s8  ;;  %p237_p13 = scmp.lt.s32.totalorder %s231_s8, %s231_s8 }
  0x1d   :  { %p238_p0 = por %p237_p13, %p236_p12 }
  0x1f   :  { %p239_p1 = pnand %p238_p0, %p232_p11 }
  0x21   :  { %242 = shalt.err (!%p239_p1)
}
  0x22   :  { %34 = dma.hbm_to_vmem [thread:$0]  %s351_s1, 256, %s29_s27, [#allocation7], %s272_s22, %s272_s22, %s273_s23  }
  0x23   :  { %265 = dma.done.wait [#allocation4], 128  }
  0x24   :  { %266 = vsyncadd [#allocation4], 4294967168 }
  0x25   :  { %267 = dma.done.wait [#allocation7], 256  }
  0x26   :  { %268 = vsyncadd [#allocation7], 4294967040  ;;  %vm48_vm0 = vcmask 785408   ;;  %v275_v0 = vmov 0.0   ;;  %vm276_vm1 = vmmov 0   ;;  %v196_v1 = vld [vmem:[#allocation6] sm:$0xff]  }
  0x27   :  { %49 = vst.msk [vmem:[#allocation2] sm:$0xff] %vm48_vm0, %v275_v0  ;;  %50 = vst.msk [vmem:[#allocation2 + $0x8] sm:$0xff] %vm48_vm0, %v275_v0  ;;  %181 = vmatprep.subr.bf16.mxu0 %v275_v0  ;;  %185 = vmatprep.mubr.msk.bf16.mxu0 %vm276_vm1, %v275_v0  ;;  %v197_v2 = vld [vmem:[#allocation6 + $0x8] sm:$0xff]   ;;  %v198_v3 = vld [vmem:[#allocation3] sm:$0xff]   ;;  %vm76_vm2 = vcmask 261120   ;;  %vm148_vm3 = vcmask 781312  }
  0x28   :  { %182 = vmatpush3.bf16.msra.mxu0 %v196_v1  ;;  %v173_v12 = vld [vmem:[%s352_s2] ss:$0 sm:$0xff]  ;;  %s277_s11 = smov [#allocation8]  }
  0x29   :  { %183 = vmatprep.subr.bf16.mxu0 %v275_v0  ;;  %s156_s12 = sshll.u32 %s277_s11, 4  ;;  %s157_s12 = int_to_ptr.vmem [resolvable:$true] %s156_s12 }
  0x2a   :  { %s243_s13 = scalar_lea.vmem %s157_s12, 128  ;;  %p248_p3 = scmp.lt.s32.totalorder %s157_s12, %s157_s12 }
  0x2b   :  { %p244_p2 = scmp.ne.s32.totalorder %s157_s12, %s243_s13  ;;  %p249_p4 = scmp.lt.s32.totalorder %s243_s13, %s243_s13 }
  0x2c   :  { %184 = vmatpush3.bf16.msra.mxu0 %v197_v2 }
  0x2d   :  { %p250_p5 = por %p249_p4, %p248_p3 }
  0x2e   :  { %v51_v4 = vld [vmem:[#allocation2] sm:$0xff]  ;;  %v52_v6 = vld [vmem:[#allocation2 + $0x8] sm:$0xff] }
  0x2f   :  { %186 = vmatmul.mubr.msk.bf16.vlgmr.msra.gmra.mrb[0].mxu0 %vm76_vm2, %v198_v3  ;;  %p251_p6 = pnand %p250_p5, %p244_p2 }
 0x102   :  { %v114_v5 = vpop.f32.mrb[0].mxu0 }
 0x103   :  { %v121_v7 = vadd.f32 %v114_v5, %v51_v4  ;;  %v187_v8 = vpop.f32.mrb[1].mxu0 }
 0x104   :  { %v117_v9 = vpop.f32.mrb[2].mxu0 }
 0x105   :  { %124 = vst.msk [vmem:[#allocation2] sm:$0xff] %vm48_vm0, %v121_v7  ;;  %v122_v10 = vadd.f32 %v117_v9, %v52_v6  ;;  %v188_v11 = vpop.f32.mrb[3].mxu0 }
 0x107   :  { %125 = vst.msk [vmem:[#allocation2 + $0x8] sm:$0xff] %vm48_vm0, %v122_v10 }
 0x10c   :  { %v129_v13 = vld [vmem:[#allocation2] sm:$0xff] }
 0x10d   :  { %v138_v14 = vadd.f32 %v173_v12, %v129_v13 }
 0x10e   :  { %v130_v15 = vld [vmem:[#allocation2 + $0x8] sm:$0xff] }
 0x10f   :  { %v139_v16 = vadd.f32 %v173_v12, %v130_v15  ;;  %v176_v17 = vpack.c.bf16 %v138_v14, %v138_v14 }
 0x111   :  { %v177_v18 = vpack.c.bf16 %v139_v16, %v139_v16  ;;  %149 = vst.msk [vmem:[#allocation8] sm:$0xf] %vm148_vm3, %v176_v17 }
 0x113   :  { %150 = vst.msk [vmem:[#allocation8 + $0x4] sm:$0xf] %vm148_vm3, %v177_v18 }
 0x114   :  { %254 = shalt.err (!%p251_p6)
}
 0x115   :  { %s255_s15 = scalar_lea.hbm %s353_s3, 128 }
 0x116   :  { %p256_p7 = scmp.ne.s32.totalorder %s353_s3, %s255_s15  ;;  %p259_p8 = scmp.lt.u32.totalorder %s255_s15, %s353_s3 }
 0x118   :  { %p261_p9 = pnand %p259_p8, %p256_p7 }
 0x11a   :  { %264 = shalt.err (!%p261_p9)
}
 0x11b   :  { %162 = dma.vmem_to_hbm [thread:$0]  %s157_s12, 128, %s353_s3, [#allocation5], %s272_s22, %s272_s22, %s273_s23  }
 0x11c   :  { %269 = dma.done.wait [#allocation5], 128  }
 0x11d   :  { %270 = vsyncadd [#allocation5], 4294967168 }
 0x11e   :  { %166 = vsyncpa [#allocation4], 1 }
 0x11f   :  { %167 = vsyncpa [#allocation7], 1 }
 0x120   :  { %168 = vsyncpa [#allocation5], 1 }

</bundles_post_ra>
